<compile_context>
chip_gen: v7x
topology: tpu7x:2x2x1
jax: 0.10.0
libtpu: 0.0.40
codegen_flags: <defaults>
</compile_context>

<pallas_src>
import functools
import math

import jax
import jax.numpy as jnp
from jax.experimental import pallas as pl
from jax.experimental.pallas import tpu as pltpu

# --- the signed permutation table defining the 32-dim hypercomplex product -------------
kernel_list = [[1, 2, 3, 4, 5, 6, 7, 8, 9, 10, 11, 12, 13, 14, 15, 16, 17, 18, 19, 20, 21, 22, 23, 24, 25, 26, 27, 28, 29, 30, 31, 32], [2, -1, 4, -3, 6, -5, -8, 7, 10, -9, -12, 11, -14, 13, 16, -15, 18, -17, -20, 19, -22, 21, 24, -23, -26, 25, 28, -27, 30, -29, -32, 31], [3, -4, -1, 2, 7, 8, -5, -6, 11, 12, -9, -10, -15, -16, 13, 14, 19, 20, -17, -18, -23, -24, 21, 22, -27, -28, 25, 26, 31, 32, -29, -30], [4, 3, -2, -1, 8, -7, 6, -5, 12, -11, 10, -9, -16, 15, -14, 13, 20, -19, 18, -17, -24, 23, -22, 21, -28, 27, -26, 25, 32, -31, 30, -29], [5, -6, -7, -8, -1, 2, 3, 4, 13, 14, 15, 16, -9, -10, -11, -12, 21, 22, 23, 24, -17, -18, -19, -20, -29, -30, -31, -32, 25, 26, 27, 28], [6, 5, -8, 7, -2, -1, -4, 3, 14, -13, 16, -15, 10, -9, 12, -11, 22, -21, 24, -23, 18, -17, 20, -19, -30, 29, -32, 31, -26, 25, -28, 27], [7, 8, 5, -6, -3, 4, -1, -2, 15, -16, -13, 14, 11, -12, -9, 10, 23, -24, -21, 22, 19, -20, -17, 18, -31, 32, 29, -30, -27, 28, 25, -26], [8, -7, 6, 5, -4, -3, 2, -1, 16, 15, -14, -13, 12, 11, -10, -9, 24, 23, -22, -21, 20, 19, -18, -17, -32, -31, 30, 29, -28, -27, 26, 25], [9, -10, -11, -12, -13, -14, -15, -16, -1, 2, 3, 4, 5, 6, 7, 8, 25, 26, 27, 28, 29, 30, 31, 32, -17, -18, -19, -20, -21, -22, -23, -24], [10, 9, -12, 11, -14, 13, 16, -15, -2, -1, -4, 3, -6, 5, 8, -7, 26, -25, 28, -27, 30, -29, -32, 31, 18, -17, 20, -19, 22, -21, -24, 23], [11, 12, 9, -10, -15, -16, 13, 14, -3, 4, -1, -2, -7, -8, 5, 6, 27, -28, -25, 26, 31, 32, -29, -30, 19, -20, -17, 18, 23, 24, -21, -22], [12, -11, 10, 9, -16, 15, -14, 13, -4, -3, 2, -1, -8, 7, -6, 5, 28, 27, -26, -25, 32, -31, 30, -29, 20, 19, -18, -17, 24, -23, 22, -21], [13, 14, 15, 16, 9, -10, -11, -12, -5, 6, 7, 8, -1, -2, -3, -4, 29, -30, -31, -32, -25, 26, 27, 28, 21, -22, -23, -24, -17, 18, 19, 20], [14, -13, 16, -15, 10, 9, 12, -11, -6, -5, 8, -7, 2, -1, 4, -3, 30, 29, -32, 31, -26, -25, -28, 27, 22, 21, -24, 23, -18, -17, -20, 19], [15, -16, -13, 14, 11, -12, 9, 10, -7, -8, -5, 6, 3, -4, -1, 2, 31, 32, 29, -30, -27, 28, -25, -26, 23, 24, 21, -22, -19, 20, -17, -18], [16, 15, -14, -13, 12, 11, -10, 9, -8, 7, -6, -5, 4, 3, -2, -1, 32, -31, 30, 29, -28, -27, 26, -25, 24, -23, 22, 21, -20, -19, 18, -17], [17, -18, -19, -20, -21, -22, -23, -24, -25, -26, -27, -28, -29, -30, -31, -32, -1, 2, 3, 4, 5, 6, 7, 8, 9, 10, 11, 12, 13, 14, 15, 16], [18, 17, -20, 19, -22, 21, 24, -23, -26, 25, 28, -27, 30, -29, -32, 31, -2, -1, -4, 3, -6, 5, 8, -7, -10, 9, 12, -11, 14, -13, -16, 15], [19, 20, 17, -18, -23, -24, 21, 22, -27, -28, 25, 26, 31, 32, -29, -30, -3, 4, -1, -2, -7, -8, 5, 6, -11, -12, 9, 10, 15, 16, -13, -14], [20, -19, 18, 17, -24, 23, -22, 21, -28, 27, -26, 25, 32, -31, 30, -29, -4, -3, 2, -1, -8, 7, -6, 5, -12, 11, -10, 9, 16, -15, 14, -13], [21, 22, 23, 24, 17, -18, -19, -20, -29, -30, -31, -32, 25, 26, 27, 28, -5, 6, 7, 8, -1, -2, -3, -4, -13, -14, -15, -16, 9, 10, 11, 12], [22, -21, 24, -23, 18, 17, 20, -19, -30, 29, -32, 31, -26, 25, -28, 27, -6, -5, 8, -7, 2, -1, 4, -3, -14, 13, -16, 15, -10, 9, -12, 11], [23, -24, -21, 22, 19, -20, 17, 18, -31, 32, 29, -30, -27, 28, 25, -26, -7, -8, -5, 6, 3, -4, -1, 2, -15, 16, 13, -14, -11, 12, 9, -10], [24, 23, -22, -21, 20, 19, -18, 17, -32, -31, 30, 29, -28, -27, 26, 25, -8, 7, -6, -5, 4, 3, -2, -1, -16, -15, 14, 13, -12, -11, 10, 9], [25, 26, 27, 28, 29, 30, 31, 32, 17, -18, -19, -20, -21, -22, -23, -24, -9, 10, 11, 12, 13, 14, 15, 16, -1, -2, -3, -4, -5, -6, -7, -8], [26, -25, 28, -27, 30, -29, -32, 31, 18, 17, 20, -19, 22, -21, -24, 23, -10, -9, 12, -11, 14, -13, -16, 15, 2, -1, 4, -3, 6, -5, -8, 7], [27, -28, -25, 26, 31, 32, -29, -30, 19, -20, 17, 18, 23, 24, -21, -22, -11, -12, -9, 10, 15, 16, -13, -14, 3, -4, -1, 2, 7, 8, -5, -6], [28, 27, -26, -25, 32, -31, 30, -29, 20, 19, -18, 17, 24, -23, 22, -21, -12, 11, -10, -9, 16, -15, 14, -13, 4, 3, -2, -1, 8, -7, 6, -5], [29, -30, -31, -32, -25, 26, 27, 28, 21, -22, -23, -24, 17, 18, 19, 20, -13, -14, -15, -16, -9, 10, 11, 12, 5, -6, -7, -8, -1, 2, 3, 4], [30, 29, -32, 31, -26, -25, -28, 27, 22, 21, -24, 23, -18, 17, -20, 19, -14, 13, -16, 15, -10, -9, -12, 11, 6, 5, -8, 7, -2, -1, -4, 3], [31, 32, 29, -30, -27, 28, -25, -26, 23, 24, 21, -22, -19, 20, 17, -18, -15, 16, 13, -14, -11, 12, -9, -10, 7, 8, 5, -6, -3, 4, -1, -2], [32, -31, 30, 29, -28, -27, 26, -25, 24, -23, 22, 21, -20, -19, 18, 17, -16, -15, 14, 13, -12, -11, 10, -9, 8, -7, 6, 5, -4, -3, 2, -1]]


# ---------------- hamilton construction (parameter glue, vectorized gather) ------------
def make_quaternion_mul(weight):
    """Vectorized JAX port of the PyTorch hamilton construction.

    weight: (in_features // 32, out_features) -> hamilton: (in_features, out_features).
    Built with a single gather + sign multiply instead of 1024 slices/negations and
    33 concatenates.
    """
    in_q, out_features = weight.shape
    dim = out_features // 32
    k = jnp.asarray(kernel_list, dtype=jnp.int32)            # (32, 32); k[j][i]
    idx = jnp.abs(k) - 1                                      # which out-block of weight
    sign = jnp.sign(k).astype(weight.dtype)
    # weight blocks: wb[m] = weight[:, m*dim:(m+1)*dim]  ->  (32, in_q, dim)
    wb = weight.reshape(in_q, 32, dim).transpose(1, 0, 2)
    ham = wb[idx] * sign[:, :, None, None]                    # (32, 32, in_q, dim); [j, i]
    # row block j, col block i  ->  (32*in_q, 32*dim) = (in_features, out_features)
    return ham.transpose(0, 2, 1, 3).reshape(32 * in_q, 32 * dim)


def make_quaternion_mul_loop_ref(weight):
    """Direct transliteration of the PyTorch loop (only used to verify the gather)."""
    in_q, out_features = weight.shape
    dim = out_features // 32
    dim_list = [weight[:, j * dim:(j + 1) * dim] for j in range(32)]
    cols = []
    for i in range(32):
        rows = []
        for j in range(32):
            k = kernel_list[j][i]
            rows.append(dim_list[k - 1] if k > 0 else -dim_list[-k - 1])
        cols.append(jnp.concatenate(rows, axis=0))
    return jnp.concatenate(cols, axis=1)


# ----------------------------- Pallas kernel (hot path) --------------------------------
def _matmul_kernel(a_ref, b_ref, o_ref, acc_ref, *, apply_relu):
    """One (i, j, k) grid step of a tiled matmul with resident f32 accumulator."""
    k = pl.program_id(2)

    @pl.when(k == 0)
    def _init():
        acc_ref[...] = jnp.zeros_like(acc_ref)

    acc_ref[...] += jnp.dot(a_ref[...], b_ref[...],
                            preferred_element_type=jnp.float32)

    @pl.when(k == pl.num_programs(2) - 1)
    def _finalize():
        out = acc_ref[...]
        if apply_relu:
            out = jnp.maximum(out, 0.0)
        o_ref[...] = out.astype(o_ref.dtype)


def _round_up(v, m):
    return ((v + m - 1) // m) * m


def matmul_pallas(a, b, *, apply_relu=False, out_dtype=jnp.float32,
                  compute_dtype=None, tm=256, tn=256, tk=512):
    """out = relu?(a @ b) via a 3-D tiled Pallas grid.

    Defaults (tm, tn, tk) = (256, 256, 512) target the 256-wide MXU on v6e/v7x and fit
    easily in VMEM (~3 MiB double-buffered in f32).  For v5e prefer (128, 128, 256).
    Inputs are zero-padded so row tiles are multiples of 8 and lane tiles multiples of
    128 (lane-dense, unmasked vst stores); padding is sliced off on return.
    """
    m, k_dim = a.shape
    k2, n = b.shape
    assert k_dim == k2, (a.shape, b.shape)

    if compute_dtype is not None:
        a = a.astype(compute_dtype)
        b = b.astype(compute_dtype)

    # Adaptive tiles for small problems; lane-dense (multiple of 128) on the last dims.
    tm = min(tm, _round_up(m, 8))
    tn = min(tn, _round_up(n, 128))
    tk = min(tk, _round_up(k_dim, 128))
    mp, kp, np_ = _round_up(m, tm), _round_up(k_dim, tk), _round_up(n, tn)

    if (mp, kp) != (m, k_dim):
        a = jnp.pad(a, ((0, mp - m), (0, kp - k_dim)))
    if (kp, np_) != (k_dim, n):
        b = jnp.pad(b, ((0, kp - k_dim), (0, np_ - n)))

    grid = (mp // tm, np_ // tn, kp // tk)   # reduction axis last ("arbitrary")

    elem = jnp.dtype(a.dtype).itemsize
    cost = pl.CostEstimate(
        flops=2 * mp * np_ * kp,
        transcendentals=0,
        bytes_accessed=(mp * kp + kp * np_) * elem + mp * np_ * jnp.dtype(out_dtype).itemsize)

    out = pl.pallas_call(
        functools.partial(_matmul_kernel, apply_relu=apply_relu),
        out_shape=jax.ShapeDtypeStruct((mp, np_), out_dtype),
        grid_spec=pltpu.PrefetchScalarGridSpec(
            num_scalar_prefetch=0,
            grid=grid,
            in_specs=[pl.BlockSpec((tm, tk), lambda i, j, kk: (i, kk)),
                      pl.BlockSpec((tk, tn), lambda i, j, kk: (kk, j))],
            out_specs=pl.BlockSpec((tm, tn), lambda i, j, kk: (i, j)),
            scratch_shapes=[pltpu.VMEM((tm, tn), jnp.float32)]),
        compiler_params=pltpu.CompilerParams(
            # i/j parallel -> megacore sharding on v7x (harmless on v5e/v6e);
            # k is the accumulator/reduction axis and stays "arbitrary".
            dimension_semantics=("parallel", "parallel", "arbitrary")),
        cost_estimate=cost,
    )(a, b)

    if (mp, np_) != (m, n):
        out = out[:m, :n]
    return out


def qgnn_layer32_forward(x, adj, weight, *, use_bf16=False):
    """Forward pass of QGNNLayer32 (quaternion_ff=True, act=relu, eval-mode dropout).

    use_bf16: cast matmul operands to bf16 (f32 MXU accumulation) for higher MXU
    throughput on v6e/v7x at a small precision cost.
    """
    # TODO(synk): dropout is identity here (PyTorch eval-mode); training-mode dropout
    #             would use pltpu.prng_seed/prng_random_bits inside the kernel.
    # TODO(synk): adj is treated dense (torch.spmm done as dense matmul); a block-sparse
    #             second stage via PrefetchScalarGridSpec per-row column-block lists
    #             would skip empty tiles for genuinely sparse graphs.
    compute_dtype = jnp.bfloat16 if use_bf16 else None
    hamilton = make_quaternion_mul(weight)          # (in_features, out_features)
    support = matmul_pallas(x, hamilton, apply_relu=False, compute_dtype=compute_dtype)
    return matmul_pallas(adj, support, apply_relu=True, compute_dtype=compute_dtype)


# ----------------------------------- reference -----------------------------------------
def qgnn_layer32_ref(x, adj, weight):
    hamilton = make_quaternion_mul(weight)
    support = jnp.dot(x, hamilton)
    return jnp.maximum(jnp.dot(adj, support), 0.0)


if __name__ == "__main__":
    def make_inputs(key, n, fin, fout):
        kx, kadj, kw = jax.random.split(key, 3)
        x = jax.random.normal(kx, (n, fin), dtype=jnp.float32)
        # Row-normalized random adjacency (dense stand-in for the sparse adj in spmm).
        adj_raw = (jax.random.uniform(kadj, (n, n)) > 0.5).astype(jnp.float32)
        adj_raw = adj_raw + jnp.eye(n, dtype=jnp.float32)
        adj = adj_raw / jnp.sum(adj_raw, axis=1, keepdims=True)
        # reset_parameters(): uniform(-stdv, stdv), stdv = sqrt(6/(in//32 + out)).
        stdv = math.sqrt(6.0 / (fin // 32 + fout))
        weight = jax.random.uniform(kw, (fin // 32, fout), minval=-stdv, maxval=stdv,
                                    dtype=jnp.float32)
        return x, adj, weight

    fwd = jax.jit(qgnn_layer32_forward, static_argnames=("use_bf16",))

    key = jax.random.PRNGKey(0)
    k1, k2 = jax.random.split(key)

    # --- config 1: module's nominal small size (N=8 nodes, 64 -> 64 features) ----------
    x, adj, weight = make_inputs(k1, 8, 64, 64)

    # Gather-based hamilton must match the PyTorch loop construction exactly.
    assert jnp.array_equal(make_quaternion_mul(weight),
                           make_quaternion_mul_loop_ref(weight)), \
        "hamilton gather mismatch vs loop construction"

    out = jax.block_until_ready(fwd(x, adj, weight))
    ref = qgnn_layer32_ref(x, adj, weight)
    assert out.shape == (8, 64)
    assert jnp.allclose(out, ref, atol=1e-4, rtol=1e-4), "f32 mismatch vs reference"

    # bf16-operand path (f32 accumulation) -- relaxed tolerance.
    out_bf16 = jax.block_until_ready(fwd(x, adj, weight, use_bf16=True))
    assert jnp.allclose(out_bf16, ref, atol=1e-1, rtol=1e-1), "bf16 mismatch vs reference"

    # --- config 2: exercises multi-tile grid and the k-reduction accumulator path ------
    x2, adj2, weight2 = make_inputs(k2, 320, 640, 256)
    out2 = jax.block_until_ready(fwd(x2, adj2, weight2))
    ref2 = qgnn_layer32_ref(x2, adj2, weight2)
    assert out2.shape == (320, 256)
    assert jnp.allclose(out2, ref2, atol=1e-2, rtol=1e-2), "tiled-grid mismatch vs reference"

    print("KERNEL_OK")
</pallas_src>

<mosaic_0001>
module attributes {stable_mosaic.version = 11 : i64} {
  func.func @_matmul_kernel(%arg0: i32, %arg1: i32, %arg2: i32, %arg3: memref<8x128xf32, #tpu.memory_space<vmem>>, %arg4: memref<128x128xf32, #tpu.memory_space<vmem>>, %arg5: memref<8x128xf32, #tpu.memory_space<vmem>>, %arg6: memref<8x128xf32, #tpu.memory_space<vmem>>) attributes {dimension_semantics = [#tpu.dimension_semantics<parallel>, #tpu.dimension_semantics<parallel>, #tpu.dimension_semantics<arbitrary>], iteration_bounds = array<i64: 1, 1, 1>, scalar_prefetch = 0 : i64, scratch_operands = 1 : i64, tpu.core_type = #tpu.core_type<tc>, window_params = [{transform_indices = @transform_0, window_bounds = array<i64: 8, 128>}, {transform_indices = @transform_1, window_bounds = array<i64: 128, 128>}, {transform_indices = @transform_2, window_bounds = array<i64: 8, 128>}]} {
    %c0_i32 = arith.constant 0 : i32
    %0 = arith.cmpi eq, %arg2, %c0_i32 : i32
    %1 = arith.extui %0 : i1 to i32
    %c0_i32_0 = arith.constant 0 : i32
    %2 = arith.cmpi ne, %1, %c0_i32_0 : i32
    scf.if %2 {
      %cst_10 = arith.constant 0.000000e+00 : f32
      %12 = vector.broadcast %cst_10 : f32 to vector<8x128xf32>
      %c0_11 = arith.constant 0 : index
      %c0_12 = arith.constant 0 : index
      %13 = vector.load %arg6[%c0_11, %c0_12] : memref<8x128xf32, #tpu.memory_space<vmem>>, vector<8x128xf32>
      tpu.vector_store %arg6[%c0_11, %c0_12], %12 {strides = array<i32>} : memref<8x128xf32, #tpu.memory_space<vmem>>, vector<8x128xf32>,
    } else {
    }
    %c0 = arith.constant 0 : index
    %c0_1 = arith.constant 0 : index
    %3 = vector.load %arg6[%c0, %c0_1] : memref<8x128xf32, #tpu.memory_space<vmem>>, vector<8x128xf32>
    %c0_2 = arith.constant 0 : index
    %c0_3 = arith.constant 0 : index
    %4 = vector.load %arg3[%c0_2, %c0_3] : memref<8x128xf32, #tpu.memory_space<vmem>>, vector<8x128xf32>
    %c0_4 = arith.constant 0 : index
    %c0_5 = arith.constant 0 : index
    %5 = vector.load %arg4[%c0_4, %c0_5] : memref<128x128xf32, #tpu.memory_space<vmem>>, vector<128x128xf32>
    %cst = arith.constant dense<0.000000e+00> : vector<8x128xf32>
    %6 = tpu.matmul %4, %5, %cst {dimension_numbers = #tpu.dot_dimension_numbers<[1], [0], [0], [1], [0, 0, 1, 1], [], []>} : vector<8x128xf32>, vector<128x128xf32>, vector<8x128xf32> -> vector<8x128xf32>
    %7 = arith.addf %3, %6 : vector<8x128xf32>
    %c0_6 = arith.constant 0 : index
    %c0_7 = arith.constant 0 : index
    %8 = vector.load %arg6[%c0_6, %c0_7] : memref<8x128xf32, #tpu.memory_space<vmem>>, vector<8x128xf32>
    tpu.vector_store %arg6[%c0_6, %c0_7], %7 {strides = array<i32>} : memref<8x128xf32, #tpu.memory_space<vmem>>, vector<8x128xf32>,
    %c0_i32_8 = arith.constant 0 : i32
    %9 = arith.cmpi eq, %arg2, %c0_i32_8 : i32
    %10 = arith.extui %9 : i1 to i32
    %c0_i32_9 = arith.constant 0 : i32
    %11 = arith.cmpi ne, %10, %c0_i32_9 : i32
    scf.if %11 {
      %c0_10 = arith.constant 0 : index
      %c0_11 = arith.constant 0 : index
      %12 = vector.load %arg6[%c0_10, %c0_11] : memref<8x128xf32, #tpu.memory_space<vmem>>, vector<8x128xf32>
      %c0_12 = arith.constant 0 : index
      %c0_13 = arith.constant 0 : index
      %13 = vector.load %arg5[%c0_12, %c0_13] : memref<8x128xf32, #tpu.memory_space<vmem>>, vector<8x128xf32>
      tpu.vector_store %arg5[%c0_12, %c0_13], %12 {strides = array<i32>} : memref<8x128xf32, #tpu.memory_space<vmem>>, vector<8x128xf32>,
    } else {
    }
    return
  }
  func.func @transform_0(%arg0: i32, %arg1: i32, %arg2: i32) -> (i32, i32) {
    %c0_i32 = arith.constant 0 : i32
    return %arg0, %arg2 : i32, i32
  }
  func.func @transform_1(%arg0: i32, %arg1: i32, %arg2: i32) -> (i32, i32) {
    %c0_i32 = arith.constant 0 : i32
    return %arg2, %arg1 : i32, i32
  }
  func.func @transform_2(%arg0: i32, %arg1: i32, %arg2: i32) -> (i32, i32) {
    %c0_i32 = arith.constant 0 : i32
    return %arg0, %arg1 : i32, i32
  }
}

module attributes {stable_mosaic.version = 11 : i64} {
  func.func @_matmul_kernel(%arg0: i32, %arg1: i32, %arg2: i32, %arg3: memref<8x128xf32, #tpu.memory_space<vmem>>, %arg4: memref<128x128xf32, #tpu.memory_space<vmem>>, %arg5: memref<8x128xf32, #tpu.memory_space<vmem>>, %arg6: memref<8x128xf32, #tpu.memory_space<vmem>>) attributes {dimension_semantics = [#tpu.dimension_semantics<parallel>, #tpu.dimension_semantics<parallel>, #tpu.dimension_semantics<arbitrary>], iteration_bounds = array<i64: 1, 1, 1>, scalar_prefetch = 0 : i64, scratch_operands = 1 : i64, tpu.core_type = #tpu.core_type<tc>, window_params = [{transform_indices = @transform_0, window_bounds = array<i64: 8, 128>}, {transform_indices = @transform_1, window_bounds = array<i64: 128, 128>}, {transform_indices = @transform_2, window_bounds = array<i64: 8, 128>}]} {
    %c0_i32 = arith.constant 0 : i32
    %0 = arith.cmpi eq, %arg2, %c0_i32 : i32
    %1 = arith.extui %0 : i1 to i32
    %c0_i32_0 = arith.constant 0 : i32
    %2 = arith.cmpi ne, %1, %c0_i32_0 : i32
    scf.if %2 {
      %cst_10 = arith.constant 0.000000e+00 : f32
      %12 = vector.broadcast %cst_10 : f32 to vector<8x128xf32>
      %c0_11 = arith.constant 0 : index
      %c0_12 = arith.constant 0 : index
      %13 = vector.load %arg6[%c0_11, %c0_12] : memref<8x128xf32, #tpu.memory_space<vmem>>, vector<8x128xf32>
      tpu.vector_store %arg6[%c0_11, %c0_12], %12 {strides = array<i32>} : memref<8x128xf32, #tpu.memory_space<vmem>>, vector<8x128xf32>,
    } else {
    }
    %c0 = arith.constant 0 : index
    %c0_1 = arith.constant 0 : index
    %3 = vector.load %arg6[%c0, %c0_1] : memref<8x128xf32, #tpu.memory_space<vmem>>, vector<8x128xf32>
    %c0_2 = arith.constant 0 : index
    %c0_3 = arith.constant 0 : index
    %4 = vector.load %arg3[%c0_2, %c0_3] : memref<8x128xf32, #tpu.memory_space<vmem>>, vector<8x128xf32>
    %c0_4 = arith.constant 0 : index
    %c0_5 = arith.constant 0 : index
    %5 = vector.load %arg4[%c0_4, %c0_5] : memref<128x128xf32, #tpu.memory_space<vmem>>, vector<128x128xf32>
    %cst = arith.constant dense<0.000000e+00> : vector<8x128xf32>
    %6 = tpu.matmul %4, %5, %cst {dimension_numbers = #tpu.dot_dimension_numbers<[1], [0], [0], [1], [0, 0, 1, 1], [], []>} : vector<8x128xf32>, vector<128x128xf32>, vector<8x128xf32> -> vector<8x128xf32>
    %7 = arith.addf %3, %6 : vector<8x128xf32>
    %c0_6 = arith.constant 0 : index
    %c0_7 = arith.constant 0 : index
    %8 = vector.load %arg6[%c0_6, %c0_7] : memref<8x128xf32, #tpu.memory_space<vmem>>, vector<8x128xf32>
    tpu.vector_store %arg6[%c0_6, %c0_7], %7 {strides = array<i32>} : memref<8x128xf32, #tpu.memory_space<vmem>>, vector<8x128xf32>,
    %c0_i32_8 = arith.constant 0 : i32
    %9 = arith.cmpi eq, %arg2, %c0_i32_8 : i32
    %10 = arith.extui %9 : i1 to i32
    %c0_i32_9 = arith.constant 0 : i32
    %11 = arith.cmpi ne, %10, %c0_i32_9 : i32
    scf.if %11 {
      %c0_10 = arith.constant 0 : index
      %c0_11 = arith.constant 0 : index
      %12 = vector.load %arg6[%c0_10, %c0_11] : memref<8x128xf32, #tpu.memory_space<vmem>>, vector<8x128xf32>
      %cst_12 = arith.constant 0.000000e+00 : f32
      %13 = vector.broadcast %cst_12 : f32 to vector<8x128xf32>
      %14 = arith.maximumf %12, %13 : vector<8x128xf32>
      %c0_13 = arith.constant 0 : index
      %c0_14 = arith.constant 0 : index
      %15 = vector.load %arg5[%c0_13, %c0_14] : memref<8x128xf32, #tpu.memory_space<vmem>>, vector<8x128xf32>
      tpu.vector_store %arg5[%c0_13, %c0_14], %14 {strides = array<i32>} : memref<8x128xf32, #tpu.memory_space<vmem>>, vector<8x128xf32>,
    } else {
    }
    return
  }
  func.func @transform_0(%arg0: i32, %arg1: i32, %arg2: i32) -> (i32, i32) {
    %c0_i32 = arith.constant 0 : i32
    return %arg0, %arg2 : i32, i32
  }
  func.func @transform_1(%arg0: i32, %arg1: i32, %arg2: i32) -> (i32, i32) {
    %c0_i32 = arith.constant 0 : i32
    return %arg2, %arg1 : i32, i32
  }
  func.func @transform_2(%arg0: i32, %arg1: i32, %arg2: i32) -> (i32, i32) {
    %c0_i32 = arith.constant 0 : i32
    return %arg0, %arg1 : i32, i32
  }
}

</mosaic_0001>

<bundles_post_ra>
// kernel: qgnn_layer32_forward.2
= control target key start
LH: loop header
LB: loop body
LE: loop exit
PB: predicated region body
PF: predicated region fallthrough
CT: control target
= control target key end

     0   :  { %v194_v0 = vmov 0.0|0.0   ;;  %vm195_vm0 = vmmov 0   ;;  %v196_v4 = vmov 0.0   ;;  %s266_s1 = inlined_call_operand.vmem [shape: f32[128,128], index: 1, kind: input, shape index: {}]   ;;  %s267_s0 = inlined_call_operand.vmem [shape: f32[8,128], index: 0, kind: input, shape index: {}]   ;;  %s268_s2 = inlined_call_operand.vmem [shape: f32[8,128], index: 2, kind: output, shape index: {}]  }
   0x1   :  { %167 = vmatprep.subr.bf16.mxu0 %v194_v0  ;;  %v18_v1 = vld [vmem:[%s266_s1] sm:$0xff]  ;;  %v19_v2 = vld [vmem:[%s266_s1 + $0x8] sm:$0xff]  ;;  %v20_v3 = vld [vmem:[%s266_s1 + $0x10] sm:$0xff]  ;;  %164 = vmatprep.mubr.msk.f32.mxu0 %vm195_vm0, %v196_v4 }
   0x2   :  { %v168_v5 = vpack.c.bf16 %v19_v2, %v18_v1  ;;  %v21_v6 = vld [vmem:[%s266_s1 + $0x18] sm:$0xff]  ;;  %v22_v8 = vld [vmem:[%s266_s1 + $0x20] sm:$0xff]  ;;  %v23_v9 = vld [vmem:[%s266_s1 + $0x28] sm:$0xff] }
   0x3   :  { %v171_v7 = vpack.c.bf16 %v21_v6, %v20_v3  ;;  %v174_v10 = vpack.c.bf16 %v23_v9, %v22_v8  ;;  %v24_v11 = vld [vmem:[%s266_s1 + $0x30] sm:$0xff]  ;;  %v25_v12 = vld [vmem:[%s266_s1 + $0x38] sm:$0xff]  ;;  %v26_v14 = vld [vmem:[%s266_s1 + $0x40] sm:$0xff] }
   0x4   :  { %169 = vmatpush3.bf16.msra.mxu0 %v168_v5  ;;  %v177_v13 = vpack.c.bf16 %v25_v12, %v24_v11  ;;  %v27_v15 = vld [vmem:[%s266_s1 + $0x48] sm:$0xff]  ;;  %v28_v17 = vld [vmem:[%s266_s1 + $0x50] sm:$0xff]  ;;  %v29_v18 = vld [vmem:[%s266_s1 + $0x58] sm:$0xff] }
   0x5   :  { %170 = vmatprep.subr.bf16.mxu0 %v194_v0  ;;  %v180_v16 = vpack.c.bf16 %v27_v15, %v26_v14  ;;  %v183_v19 = vpack.c.bf16 %v29_v18, %v28_v17  ;;  %v30_v20 = vld [vmem:[%s266_s1 + $0x60] sm:$0xff]  ;;  %v31_v21 = vld [vmem:[%s266_s1 + $0x68] sm:$0xff]  ;;  %v32_v23 = vld [vmem:[%s266_s1 + $0x70] sm:$0xff] }
   0x6   :  { %v186_v22 = vpack.c.bf16 %v31_v21, %v30_v20  ;;  %v33_v24 = vld [vmem:[%s266_s1 + $0x78] sm:$0xff]  ;;  %v17_v26 = vld [vmem:[%s267_s0] sm:$0xff] }
   0x7   :  { %v189_v25 = vpack.c.bf16 %v33_v24, %v32_v23 }
   0x8   :  { %172 = vmatpush3.bf16.msra.mxu0 %v171_v7 }
   0x9   :  { %173 = vmatprep.subr.bf16.mxu0 %v194_v0 }
   0xc   :  { %175 = vmatpush3.bf16.msra.mxu0 %v174_v10 }
   0xd   :  { %176 = vmatprep.subr.bf16.mxu0 %v194_v0 }
  0x10   :  { %178 = vmatpush3.bf16.msra.mxu0 %v177_v13 }
  0x11   :  { %179 = vmatprep.subr.bf16.mxu0 %v194_v0 }
  0x14   :  { %181 = vmatpush3.bf16.msra.mxu0 %v180_v16 }
  0x15   :  { %182 = vmatprep.subr.bf16.mxu0 %v194_v0 }
  0x18   :  { %184 = vmatpush3.bf16.msra.mxu0 %v183_v19 }
  0x19   :  { %185 = vmatprep.subr.bf16.mxu0 %v194_v0 }
  0x1c   :  { %187 = vmatpush3.bf16.msra.mxu0 %v186_v22 }
  0x1d   :  { %188 = vmatprep.subr.bf16.mxu0 %v194_v0 }
  0x20   :  { %190 = vmatpush3.bf16.msra.mxu0 %v189_v25 }
  0x23   :  { %165 = vmatmul.mubr.f32.vlgmr.msra.gmra.mrb[0].mxu0 %v17_v26 }
  0xf6   :  { %v100_v27 = vpop.f32.mrb[0].mxu0 }
  0xf7   :  { %110 = vst [vmem:[%s268_s2] sm:$0xff] %v100_v27  ;;  %v166_v28 = vpop.f32.mrb[1].mxu0 }

// kernel: qgnn_layer32_forward.3
= control target key start
LH: loop header
LB: loop body
LE: loop exit
PB: predicated region body
PF: predicated region fallthrough
CT: control target
= control target key end

     0   :  { %v231_v3 = vmov 0.0|0.0   ;;  %vm232_vm0 = vmmov 0   ;;  %v233_v6 = vmov 0.0   ;;  %s313_s0 = inlined_call_operand.vmem [shape: f32[8,128], index: 0, kind: input, shape index: {}]   ;;  %s314_s1 = inlined_call_operand.vmem [shape: f32[128,128], index: 1, kind: input, shape index: {}]   ;;  %s315_s2 = inlined_call_operand.hbm [shape: f32[8,128], index: 2, kind: output, shape index: {}]  }
   0x1   :  { %v19_v0 = vld [vmem:[%s314_s1] sm:$0xff]  ;;  %v20_v1 = vld [vmem:[%s314_s1 + $0x8] sm:$0xff]  ;;  %v21_v2 = vld [vmem:[%s314_s1 + $0x10] sm:$0xff]  ;;  %179 = vmatprep.subr.bf16.mxu0 %v231_v3  ;;  %176 = vmatprep.mubr.msk.f32.mxu0 %vm232_vm0, %v233_v6 }
   0x2   :  { %v180_v4 = vpack.c.bf16 %v20_v1, %v19_v0  ;;  %v22_v5 = vld [vmem:[%s314_s1 + $0x18] sm:$0xff]  ;;  %v23_v8 = vld [vmem:[%s314_s1 + $0x20] sm:$0xff]  ;;  %v24_v9 = vld [vmem:[%s314_s1 + $0x28] sm:$0xff] }
   0x3   :  { %v183_v7 = vpack.c.bf16 %v22_v5, %v21_v2 }
   0x4   :  { %181 = vmatpush3.bf16.msra.mxu0 %v180_v4 }
   0x5   :  { %182 = vmatprep.subr.bf16.mxu0 %v231_v3 }
   0x6   :  { %7 = vsyncpa [#allocation4], 0  ;;  %v186_v10 = vpack.c.bf16 %v24_v9, %v23_v8  ;;  %v25_v11 = vld [vmem:[%s314_s1 + $0x30] sm:$0xff]  ;;  %v26_v12 = vld [vmem:[%s314_s1 + $0x38] sm:$0xff]  ;;  %s234_s15 = smov [#allocation3]  }
   0x7   :  { %v189_v13 = vpack.c.bf16 %v26_v12, %v25_v11  ;;  %v27_v14 = vld [vmem:[%s314_s1 + $0x40] sm:$0xff]  ;;  %v28_v15 = vld [vmem:[%s314_s1 + $0x48] sm:$0xff]  ;;  %v29_v17 = vld [vmem:[%s314_s1 + $0x50] sm:$0xff]  ;;  %s119_s16 = sshll.u32 %s234_s15, 4  ;;  %s120_s16 = int_to_ptr.vmem [resolvable:$true] %s119_s16 }
   0x8   :  { %184 = vmatpush3.bf16.msra.mxu0 %v183_v7  ;;  %v192_v16 = vpack.c.bf16 %v28_v15, %v27_v14  ;;  %v30_v18 = vld [vmem:[%s314_s1 + $0x58] sm:$0xff]  ;;  %v31_v20 = vld [vmem:[%s314_s1 + $0x60] sm:$0xff]  ;;  %v32_v21 = vld [vmem:[%s314_s1 + $0x68] sm:$0xff]  ;;  %s207_s17 = scalar_lea.vmem %s120_s16, 128  ;;  %p212_p1 = scmp.lt.s32.totalorder %s120_s16, %s120_s16 }
   0x9   :  { %185 = vmatprep.subr.bf16.mxu0 %v231_v3  ;;  %v195_v19 = vpack.c.bf16 %v30_v18, %v29_v17  ;;  %v198_v22 = vpack.c.bf16 %v32_v21, %v31_v20  ;;  %v33_v23 = vld [vmem:[%s314_s1 + $0x70] sm:$0xff]  ;;  %v34_v24 = vld [vmem:[%s314_s1 + $0x78] sm:$0xff]  ;;  %v18_v26 = vld [vmem:[%s313_s0] sm:$0xff]  ;;  %p208_p0 = scmp.ne.s32.totalorder %s120_s16, %s207_s17  ;;  %p213_p2 = scmp.lt.s32.totalorder %s207_s17, %s207_s17 }
   0xa   :  { %v201_v25 = vpack.c.bf16 %v34_v24, %v33_v23 }
   0xb   :  { %p214_p3 = por %p213_p2, %p212_p1 }
   0xc   :  { %187 = vmatpush3.bf16.msra.mxu0 %v186_v10 }
   0xd   :  { %188 = vmatprep.subr.bf16.mxu0 %v231_v3  ;;  %p215_p4 = pnand %p214_p3, %p208_p0 }
  0x10   :  { %190 = vmatpush3.bf16.msra.mxu0 %v189_v13 }
  0x11   :  { %191 = vmatprep.subr.bf16.mxu0 %v231_v3 }
  0x14   :  { %193 = vmatpush3.bf16.msra.mxu0 %v192_v16 }
  0x15   :  { %194 = vmatprep.subr.bf16.mxu0 %v231_v3 }
  0x18   :  { %196 = vmatpush3.bf16.msra.mxu0 %v195_v19 }
  0x19   :  { %197 = vmatprep.subr.bf16.mxu0 %v231_v3 }
  0x1c   :  { %199 = vmatpush3.bf16.msra.mxu0 %v198_v22 }
  0x1d   :  { %200 = vmatprep.subr.bf16.mxu0 %v231_v3 }
  0x20   :  { %202 = vmatpush3.bf16.msra.mxu0 %v201_v25 }
  0x23   :  { %177 = vmatmul.mubr.f32.vlgmr.msra.gmra.mrb[0].mxu0 %v18_v26 }
  0xf6   :  { %v101_v27 = vpop.f32.mrb[0].mxu0 }
  0xf7   :  { %v111_v28 = vmax.f32 %v101_v27, 0.0  ;;  %v178_v29 = vpop.f32.mrb[1].mxu0 }
  0xf9   :  { %112 = vst [vmem:[#allocation3] sm:$0xff] %v111_v28 }
  0xfa   :  { %218 = shalt.err (!%p215_p4)
}
  0xfb   :  { %s219_s19 = scalar_lea.hbm %s315_s2, 128 }
  0xfc   :  { %p220_p5 = scmp.ne.s32.totalorder %s315_s2, %s219_s19  ;;  %p223_p6 = scmp.lt.u32.totalorder %s219_s19, %s315_s2 }
  0xfe   :  { %p225_p7 = pnand %p223_p6, %p220_p5 }
 0x100   :  { %228 = shalt.err (!%p225_p7)
}
 0x101   :  { %122 = dma.vmem_to_hbm [thread:$0]  %s120_s16, 128, %s315_s2, [#allocation4]  }
 0x102   :  { %229 = dma.done.wait [#allocation4], 128  }
 0x103   :  { %230 = vsyncadd [#allocation4], 4294967168 }
 0x104   :  { %126 = vsyncpa [#allocation4], 1 }

</bundles_post_ra>
